<compile_context>
chip_gen: v7x
topology: tpu7x:2x2x1
jax: 0.10.0
libtpu: 0.0.40
codegen_flags: <defaults>
</compile_context>

<pallas_src>
import jax
import jax.numpy as jnp
from jax.experimental import pallas as pl
from jax.experimental.pallas import tpu as pltpu


# --------------------------------------------------------------------------- #
# Kernels
# --------------------------------------------------------------------------- #
def _trae_resident_kernel(x_ref, w_ref, t_ref, o_ref):
    """Resident-W path.  grid = (M/tm,); W and threshold live in VMEM."""
    acc = jnp.dot(x_ref[...], w_ref[...], preferred_element_type=jnp.float32)
    o_ref[...] = (acc - t_ref[...].astype(jnp.float32)).astype(o_ref.dtype)


def _trae_tiled_kernel(x_ref, w_ref, t_ref, o_ref, acc_ref):
    """Tiled path.  grid = (M/tm, N/tn, K/tk); K (axis 2) is the reduction."""
    k = pl.program_id(2)

    @pl.when(k == 0)
    def _init():
        acc_ref[...] = jnp.zeros_like(acc_ref)

    acc_ref[...] += jnp.dot(
        x_ref[...], w_ref[...], preferred_element_type=jnp.float32
    )

    @pl.when(k == pl.num_programs(2) - 1)
    def _finalize():
        # Threshold subtraction only in the epilogue (once per output tile).
        out = acc_ref[...] - t_ref[...].astype(jnp.float32)
        o_ref[...] = out.astype(o_ref.dtype)


# --------------------------------------------------------------------------- #
# Sizing helpers
# --------------------------------------------------------------------------- #
def _vmem_capacity_bytes():
    """Per-TensorCore VMEM capacity; conservative 64 MiB (v7x) fallback."""
    try:
        info = pltpu.get_tpu_info()
        cap = getattr(info, "vmem_capacity_bytes", None)
        if cap:
            return int(cap)
    except Exception:
        pass
    return 64 * 2**20


def _round_up(v, m):
    return ((v + m - 1) // m) * m


def _balanced_tm(m, tm_max, prefer_even_tiles):
    """Row-tile size: balanced ragged tail, multiple of 8, optionally an even
    number of tiles (keeps v7x's two TensorCores busy on the parallel axis)."""
    if m <= 0:
        return 8
    n_tiles = max(1, -(-m // tm_max))
    if prefer_even_tiles and n_tiles % 2 == 1 and (n_tiles > 1 or m >= 256):
        n_tiles += 1
    if n_tiles == 1:
        return m  # single block == full extent (always layout-legal)
    return _round_up(-(-m // n_tiles), 8)


def _pick_divisor_tile(total, candidates):
    """Largest preferred tile that evenly divides `total`; else full extent."""
    for c in candidates:
        if c <= total and total % c == 0:
            return c
    return total


# --------------------------------------------------------------------------- #
# Wrapper
# --------------------------------------------------------------------------- #
def trae_layer(x, weights, threshold, *, tm=None, tn=None, tk=None,
               force_path="auto"):
    """x: (..., dim); weights: (dim, dim); threshold: (dim, 1)."""
    orig_shape = x.shape
    dim = weights.shape[0]
    assert weights.shape == (dim, dim), "weights must be square (dim, dim)"
    assert threshold.shape == (dim, 1), "threshold must be (dim, 1)"
    assert orig_shape[-1] == dim, "x last dim must equal dim"

    x2d = x.reshape(-1, dim)             # flatten leading dims -> M rows
    M = x2d.shape[0]
    thr_row = threshold.reshape(1, dim)  # threshold.T, broadcast over rows

    x_isz = x2d.dtype.itemsize
    w_isz = weights.dtype.itemsize
    t_isz = thr_row.dtype.itemsize
    o_isz = x_isz

    capacity = _vmem_capacity_bytes()
    budget = int(0.8 * capacity)          # headroom for compiler scratch
    big_vmem = capacity >= 96 * 2**20     # v5e / v6e (128 MiB); v7x has 64 MiB

    # ----------------------- resident-W fast path --------------------------- #
    # Constant index_maps pin W and threshold in VMEM (fetched once from HBM);
    # only x / out row-tiles are streamed, so HBM traffic is minimal and there
    # is no K-accumulator round trip or per-K-step overhead.
    tm_res_max = 1024 if big_vmem else 512
    tm_res = tm if tm is not None else _balanced_tm(
        M, tm_res_max, prefer_even_tiles=True)
    resident_bytes = (
        2 * dim * dim * w_isz          # W (double-buffered allocation, 1 fetch)
        + 2 * dim * t_isz              # threshold row
        + 2 * tm_res * dim * x_isz     # x tile (double-buffered)
        + 2 * tm_res * dim * o_isz     # out tile (double-buffered)
    )
    use_resident = (force_path == "resident") or (
        force_path == "auto"
        and tn is None and tk is None
        and resident_bytes + (4 << 20) <= budget
    )

    if use_resident:
        grid = (pl.cdiv(M, tm_res),)
        vmem_limit = int(min(max(resident_bytes + (4 << 20), 32 * 2**20),
                             budget))
        cost = pl.CostEstimate(
            flops=2 * M * dim * dim,
            transcendentals=0,
            bytes_accessed=int(M * dim * x_isz + dim * dim * w_isz
                               + dim * t_isz + M * dim * o_isz),
        )
        out = pl.pallas_call(
            _trae_resident_kernel,
            out_shape=jax.ShapeDtypeStruct((M, dim), x.dtype),
            grid_spec=pltpu.PrefetchScalarGridSpec(
                num_scalar_prefetch=0,
                grid=grid,
                in_specs=[
                    pl.BlockSpec((tm_res, dim), lambda i: (i, 0)),  # x rows
                    pl.BlockSpec((dim, dim), lambda i: (0, 0)),     # resident W
                    pl.BlockSpec((1, dim), lambda i: (0, 0)),       # threshold
                ],
                out_specs=pl.BlockSpec((tm_res, dim), lambda i: (i, 0)),
            ),
            compiler_params=pltpu.CompilerParams(
                dimension_semantics=("parallel",),
                vmem_limit_bytes=vmem_limit,
            ),
            cost_estimate=cost,
        )(x2d, weights, thr_row)
        return out.reshape(orig_shape)

    # ----------------------- tiled M/N/K fallback --------------------------- #
    if big_vmem:
        # v5e/v6e: large VMEM -> larger tiles, halves W/x HBM re-reads.
        tm_t_max, tn_cands, tk_cands = 1024, (1024, 512, 256, 128), (512, 256, 128)
    else:
        # v7x: 64 MiB VMEM -> keep tiles modest, leave double-buffer headroom.
        tm_t_max, tn_cands, tk_cands = 512, (512, 256, 128), (256, 512, 128)

    tm_t = tm if tm is not None else _balanced_tm(
        M, tm_t_max, prefer_even_tiles=False)
    tn_t = tn if tn is not None else _pick_divisor_tile(dim, tn_cands)
    tk_t = tk if tk is not None else _pick_divisor_tile(dim, tk_cands)
    assert dim % tn_t == 0 and dim % tk_t == 0, "tn/tk must divide dim"

    grid = (pl.cdiv(M, tm_t), dim // tn_t, dim // tk_t)

    est_vmem = (
        2 * tm_t * tk_t * x_isz            # x tile (double-buffered)
        + 2 * tk_t * tn_t * w_isz          # W tile
        + 2 * tn_t * t_isz                 # threshold tile
        + 2 * tm_t * tn_t * o_isz          # out tile
        + tm_t * tn_t * 4                  # f32 accumulator scratch
    )
    vmem_limit = int(min(max(2 * est_vmem, 32 * 2**20), budget))

    cost = pl.CostEstimate(
        flops=2 * M * dim * dim,
        transcendentals=0,
        bytes_accessed=int(
            M * dim * x_isz * (dim // tn_t)            # x re-read per N tile
            + dim * dim * w_isz * pl.cdiv(M, tm_t)     # W re-read per M tile
            + dim * t_isz
            + M * dim * o_isz
        ),
    )

    out = pl.pallas_call(
        _trae_tiled_kernel,
        out_shape=jax.ShapeDtypeStruct((M, dim), x.dtype),
        grid_spec=pltpu.PrefetchScalarGridSpec(
            num_scalar_prefetch=0,
            grid=grid,
            in_specs=[
                pl.BlockSpec((tm_t, tk_t), lambda i, j, k: (i, k)),  # x M/K
                pl.BlockSpec((tk_t, tn_t), lambda i, j, k: (k, j)),  # W K/N
                pl.BlockSpec((1, tn_t), lambda i, j, k: (0, j)),     # threshold
            ],
            out_specs=pl.BlockSpec((tm_t, tn_t), lambda i, j, k: (i, j)),
            scratch_shapes=[pltpu.VMEM((tm_t, tn_t), jnp.float32)],
        ),
        compiler_params=pltpu.CompilerParams(
            dimension_semantics=("parallel", "parallel", "arbitrary"),
            vmem_limit_bytes=vmem_limit,
        ),
        cost_estimate=cost,
    )(x2d, weights, thr_row)
    return out.reshape(orig_shape)


def init_trae_params(key, dim, dtype=jnp.float32):
    kw, kt = jax.random.split(key)
    weights = jax.random.normal(kw, (dim, dim), dtype=dtype)
    # matches torch: weights.data.fill_diagonal_(0)
    weights = weights * (1.0 - jnp.eye(dim, dtype=dtype))
    threshold = jax.random.normal(kt, (dim, 1), dtype=dtype)
    return weights, threshold


if __name__ == "__main__":
    key = jax.random.PRNGKey(0)
    kx, kp, kx2, kp2 = jax.random.split(key, 4)

    # --- small shapes consistent with the module spec (single-tile path) ----
    batch, seq, dim = 2, 8, 32
    x = jax.random.normal(kx, (batch, seq, dim), dtype=jnp.float32)
    weights, threshold = init_trae_params(kp, dim)

    out = trae_layer(x, weights, threshold)
    jax.block_until_ready(out)
    ref = jnp.matmul(x, weights) - threshold.T
    assert out.shape == x.shape
    # Both kernel and reference use the MXU's default f32 precision path.
    assert jnp.allclose(out, ref, atol=2e-2, rtol=2e-2), \
        f"small max_err={float(jnp.max(jnp.abs(out - ref)))}"

    # --- larger shape: resident-W path, multiple row tiles + ragged M tail ---
    batch2, seq2, dim2 = 4, 321, 256     # M = 1284 (not a multiple of the tile)
    x2 = jax.random.normal(kx2, (batch2, seq2, dim2), dtype=jnp.float32)
    w2, t2 = init_trae_params(kp2, dim2)

    out2 = trae_layer(x2, w2, t2)
    jax.block_until_ready(out2)
    ref2 = jnp.matmul(x2, w2) - t2.T
    max_err = float(jnp.max(jnp.abs(out2 - ref2)))
    assert max_err < 2e-1, f"resident path max_err={max_err}"

    # --- same problem forced through the tiled M/N/K fallback (accumulator) --
    out3 = trae_layer(x2, w2, t2, tm=256, tn=128, tk=128, force_path="tiled")
    jax.block_until_ready(out3)
    max_err3 = float(jnp.max(jnp.abs(out3 - ref2)))
    assert max_err3 < 2e-1, f"tiled path max_err={max_err3}"

    print("KERNEL_OK")
</pallas_src>

<mosaic_0001>
module attributes {stable_mosaic.version = 11 : i64} {
  func.func @_trae_resident_kernel(%arg0: i32, %arg1: memref<16x32xf32, #tpu.memory_space<vmem>>, %arg2: memref<32x32xf32, #tpu.memory_space<vmem>>, %arg3: memref<1x32xf32, #tpu.memory_space<vmem>>, %arg4: memref<16x32xf32, #tpu.memory_space<vmem>>) attributes {dimension_semantics = [#tpu.dimension_semantics<parallel>], iteration_bounds = array<i64: 1>, scalar_prefetch = 0 : i64, scratch_operands = 0 : i64, tpu.core_type = #tpu.core_type<tc>, window_params = [{transform_indices = @transform_0, window_bounds = array<i64: 16, 32>}, {pipeline_mode = #tpu.pipeline_mode<synchronous>, transform_indices = @transform_1, window_bounds = array<i64: 32, 32>}, {pipeline_mode = #tpu.pipeline_mode<synchronous>, transform_indices = @transform_2, window_bounds = array<i64: 1, 32>}, {transform_indices = @transform_3, window_bounds = array<i64: 16, 32>}]} {
    %c0 = arith.constant 0 : index
    %c0_0 = arith.constant 0 : index
    %0 = vector.load %arg1[%c0, %c0_0] : memref<16x32xf32, #tpu.memory_space<vmem>>, vector<16x32xf32>
    %c0_1 = arith.constant 0 : index
    %c0_2 = arith.constant 0 : index
    %1 = vector.load %arg2[%c0_1, %c0_2] : memref<32x32xf32, #tpu.memory_space<vmem>>, vector<32x32xf32>
    %cst = arith.constant dense<0.000000e+00> : vector<16x32xf32>
    %2 = tpu.matmul %0, %1, %cst {dimension_numbers = #tpu.dot_dimension_numbers<[1], [0], [0], [1], [0, 0, 1, 1], [], []>} : vector<16x32xf32>, vector<32x32xf32>, vector<16x32xf32> -> vector<16x32xf32>
    %c0_3 = arith.constant 0 : index
    %c0_4 = arith.constant 0 : index
    %3 = vector.load %arg3[%c0_3, %c0_4] : memref<1x32xf32, #tpu.memory_space<vmem>>, vector<1x32xf32>
    %4 = vector.broadcast %3 : vector<1x32xf32> to vector<16x32xf32>
    %5 = arith.subf %2, %4 : vector<16x32xf32>
    %c0_5 = arith.constant 0 : index
    %c0_6 = arith.constant 0 : index
    %6 = vector.load %arg4[%c0_5, %c0_6] : memref<16x32xf32, #tpu.memory_space<vmem>>, vector<16x32xf32>
    tpu.vector_store %arg4[%c0_5, %c0_6], %5 {strides = array<i32>} : memref<16x32xf32, #tpu.memory_space<vmem>>, vector<16x32xf32>,
    return
  }
  func.func @transform_0(%arg0: i32) -> (i32, i32) {
    %c0_i32 = arith.constant 0 : i32
    %c0_i32_0 = arith.constant 0 : i32
    return %arg0, %c0_i32 : i32, i32
  }
  func.func @transform_1(%arg0: i32) -> (i32, i32) {
    %c0_i32 = arith.constant 0 : i32
    %c0_i32_0 = arith.constant 0 : i32
    %c0_i32_1 = arith.constant 0 : i32
    return %c0_i32, %c0_i32_0 : i32, i32
  }
  func.func @transform_2(%arg0: i32) -> (i32, i32) {
    %c0_i32 = arith.constant 0 : i32
    %c0_i32_0 = arith.constant 0 : i32
    %c0_i32_1 = arith.constant 0 : i32
    return %c0_i32, %c0_i32_0 : i32, i32
  }
  func.func @transform_3(%arg0: i32) -> (i32, i32) {
    %c0_i32 = arith.constant 0 : i32
    %c0_i32_0 = arith.constant 0 : i32
    return %arg0, %c0_i32 : i32, i32
  }
}

</mosaic_0001>

<bundles_post_ra>
// kernel: tpu_custom_call.1
= control target key start
LH: loop header
LB: loop body
LE: loop exit
PB: predicated region body
PF: predicated region fallthrough
CT: control target
= control target key end

     0   :  { %8 = vsyncpa [#allocation3], 0  ;;  %s342_s0 = inlined_call_operand.hbm [shape: f32[16,32], index: 0, kind: input, shape index: {}]   ;;  %s343_s1 = inlined_call_operand.hbm [shape: f32[32,32], index: 1, kind: input, shape index: {}]   ;;  %s344_s2 = inlined_call_operand.vmem [shape: f32[1,32], index: 2, kind: input, shape index: {}]   ;;  %s345_s3 = inlined_call_operand.hbm [shape: f32[16,32], index: 3, kind: output, shape index: {}]  }
   0x1   :  { %9 = vsyncpa [#allocation6], 0 }
   0x2   :  { %10 = vsyncpa [#allocation4], 0  ;;  %s265_s12 = smov [#allocation2]   ;;  %s193_s16 = scalar_lea.hbm %s342_s0, 256 }
   0x3   :  { %s16_s13 = sshll.u32 %s265_s12, 4  ;;  %p194_p0 = scmp.ne.s32.totalorder %s342_s0, %s193_s16  ;;  %s17_s13 = int_to_ptr.vmem [resolvable:$true] %s16_s13 }
   0x4   :  { %p197_p1 = scmp.lt.u32.totalorder %s193_s16, %s342_s0 }
   0x6   :  { %p199_p2 = pnand %p197_p1, %p194_p0 }
   0x8   :  { %202 = shalt.err (!%p199_p2)
}
   0x9   :  { %s203_s21 = scalar_lea.vmem %s17_s13, 256  ;;  %p208_p4 = scmp.lt.s32.totalorder %s17_s13, %s17_s13 }
   0xa   :  { %p204_p3 = scmp.ne.s32.totalorder %s17_s13, %s203_s21  ;;  %p209_p5 = scmp.lt.s32.totalorder %s203_s21, %s203_s21 }
   0xc   :  { %p210_p6 = por %p209_p5, %p208_p4 }
   0xe   :  { %p211_p7 = pnand %p210_p6, %p204_p3 }
  0x10   :  { %214 = shalt.err (!%p211_p7)
}
  0x11   :  { %s266_s22 = smov 128   ;;  %s267_s23 = smov 8  }
  0x12   :  { %22 = dma.hbm_to_vmem [thread:$0]  %s342_s0, 256, %s17_s13, [#allocation3], %s266_s22, %s266_s22, %s267_s23  }
  0x13   :  { %s268_s26 = smov [#allocation5]   ;;  %s215_s30 = scalar_lea.hbm %s343_s1, 512 }
  0x14   :  { %s28_s27 = sshll.u32 %s268_s26, 4  ;;  %p216_p8 = scmp.ne.s32.totalorder %s343_s1, %s215_s30  ;;  %s29_s27 = int_to_ptr.vmem [resolvable:$true] %s28_s27 }
  0x15   :  { %p219_p9 = scmp.lt.u32.totalorder %s215_s30, %s343_s1 }
  0x17   :  { %p221_p10 = pnand %p219_p9, %p216_p8 }
  0x19   :  { %224 = shalt.err (!%p221_p10)
}
  0x1a   :  { %s225_s8 = scalar_lea.vmem %s29_s27, 512  ;;  %p230_p12 = scmp.lt.s32.totalorder %s29_s27, %s29_s27 }
  0x1b   :  { %p226_p11 = scmp.ne.s32.totalorder %s29_s27, %s225_s8  ;;  %p231_p13 = scmp.lt.s32.totalorder %s225_s8, %s225_s8 }
  0x1d   :  { %p232_p0 = por %p231_p13, %p230_p12 }
  0x1f   :  { %p233_p1 = pnand %p232_p0, %p226_p11 }
  0x21   :  { %236 = shalt.err (!%p233_p1)
}
  0x22   :  { %34 = dma.hbm_to_vmem [thread:$0]  %s343_s1, 512, %s29_s27, [#allocation6], %s266_s22, %s266_s22, %s267_s23  }
  0x23   :  { %259 = dma.done.wait [#allocation3], 256  }
  0x24   :  { %260 = vsyncadd [#allocation3], 4294967040 }
  0x25   :  { %261 = dma.done.wait [#allocation6], 512  }
  0x26   :  { %262 = vsyncadd [#allocation6], 4294966784  ;;  %vm49_vm0 = vcmask 261120   ;;  %v45_v0 = vld [vmem:[#allocation5] sm:$0xff]  ;;  %v46_v1 = vld [vmem:[#allocation5 + $0x8] sm:$0xff]  ;;  %s269_s11 = smov [#allocation7]  }
  0x27   :  { %v47_v2 = vld [vmem:[#allocation5 + $0x10] sm:$0xff]  ;;  %v180_v3 = vpack.c.bf16 %v46_v1, %v45_v0  ;;  %v48_v4 = vld [vmem:[#allocation5 + $0x18] sm:$0xff]  ;;  %s147_s12 = sshll.u32 %s269_s11, 4  ;;  %s148_s12 = int_to_ptr.vmem [resolvable:$true] %s147_s12 }
  0x28   :  { %v43_v5 = vld [vmem:[#allocation2] sm:$0xff]  ;;  %v184_v6 = vpack.c.bf16 %v48_v4, %v47_v2  ;;  %v44_v7 = vld [vmem:[#allocation2 + $0x8] sm:$0xff]  ;;  %s237_s13 = scalar_lea.vmem %s148_s12, 256  ;;  %p242_p3 = scmp.lt.s32.totalorder %s148_s12, %s148_s12 }
  0x29   :  { %177 = vmatprep.mubr.msk.f32.mxu0 %vm49_vm0, %v43_v5  ;;  %181 = vmatprep.subr.bf16.mxu0 %v180_v3  ;;  %v162_v8 = vld [vmem:[%s344_s2] ss:$0 sm:$0xff]  ;;  %p238_p2 = scmp.ne.s32.totalorder %s148_s12, %s237_s13  ;;  %p243_p4 = scmp.lt.s32.totalorder %s237_s13, %s237_s13 }
  0x2a   :  { %183 = vmatpush3.bf16.msra.mxu0 %v180_v3 }
  0x2b   :  { %185 = vmatprep.subr.bf16.mxu0 %v184_v6  ;;  %p244_p5 = por %p243_p4, %p242_p3 }
  0x2d   :  { %p245_p6 = pnand %p244_p5, %p238_p2 }
  0x2e   :  { %187 = vmatpush3.bf16.msra.mxu0 %v184_v6 }
  0x31   :  { %178 = vmatmul.mubr.msk.f32.vlgmr.msra.gmra.mrb[0].mxu0 %vm49_vm0, %v44_v7 }
 0x104   :  { %v179_v9 = vpop.f32.mrb[0].mxu0 }
 0x105   :  { %v139_v10 = vsub.f32 %v179_v9, %v162_v8  ;;  %v122_v11 = vpop.f32.mrb[1].mxu0 }
 0x106   :  { %v138_v12 = vsub.f32 %v122_v11, %v162_v8 }
 0x107   :  { %141 = vst.msk [vmem:[#allocation7 + $0x8] sm:$0xff] %vm49_vm0, %v139_v10 }
 0x108   :  { %140 = vst.msk [vmem:[#allocation7] sm:$0xff] %vm49_vm0, %v138_v12 }
 0x109   :  { %248 = shalt.err (!%p245_p6)
}
 0x10a   :  { %s249_s15 = scalar_lea.hbm %s345_s3, 256 }
 0x10b   :  { %p250_p7 = scmp.ne.s32.totalorder %s345_s3, %s249_s15  ;;  %p253_p8 = scmp.lt.u32.totalorder %s249_s15, %s345_s3 }
 0x10d   :  { %p255_p9 = pnand %p253_p8, %p250_p7 }
 0x10f   :  { %258 = shalt.err (!%p255_p9)
}
 0x110   :  { %153 = dma.vmem_to_hbm [thread:$0]  %s148_s12, 256, %s345_s3, [#allocation4], %s266_s22, %s266_s22, %s267_s23  }
 0x111   :  { %263 = dma.done.wait [#allocation4], 256  }
 0x112   :  { %264 = vsyncadd [#allocation4], 4294967040 }
 0x113   :  { %157 = vsyncpa [#allocation3], 1 }
 0x114   :  { %158 = vsyncpa [#allocation6], 1 }
 0x115   :  { %159 = vsyncpa [#allocation4], 1 }

</bundles_post_ra>
